<compile_context>
chip_gen: v7x
topology: tpu7x:2x2x1
jax: 0.10.0
libtpu: 0.0.40
codegen_flags: <defaults>
</compile_context>

<pallas_src>
import math

import jax
import jax.numpy as jnp
from jax.experimental import pallas as pl
from jax.experimental.pallas import tpu as pltpu


def _round_up(x, m):
    return ((x + m - 1) // m) * m


def _cdiv(a, b):
    return (a + b - 1) // b


# ----------------------------- Pallas kernel --------------------------------
def vanilla_generator_kernel(z_ref, w1_ref, b1_ref, w2_ref, b2_ref,
                             w3_ref, b3_ref, out_ref):
    """Fused 3-layer MLP on one (TM, Z) batch tile:
       (Linear+ReLU) -> (Linear+ReLU) -> (Linear+Tanh)."""
    z = z_ref[...]                                                    # bf16 tile

    h1 = jnp.dot(z, w1_ref[...], preferred_element_type=jnp.float32) + b1_ref[...]
    h1 = jnp.maximum(h1, 0.0).astype(jnp.bfloat16)                    # ReLU (f32 math)

    h2 = jnp.dot(h1, w2_ref[...], preferred_element_type=jnp.float32) + b2_ref[...]
    h2 = jnp.maximum(h2, 0.0).astype(jnp.bfloat16)                    # ReLU (f32 math)

    h3 = jnp.dot(h2, w3_ref[...], preferred_element_type=jnp.float32) + b3_ref[...]
    out_ref[...] = jnp.tanh(h3).astype(out_ref.dtype)                 # Tanh, bf16 store


# ------------------------------- wrapper -------------------------------------
def prepare_params(params, hidden_pad=128):
    """Cast to bf16 (weights) / f32 (biases) and zero-pad hidden1 64 -> hidden_pad.

    Zero-padded w1 columns + zero b1 entries give h1_pad = ReLU(0) = 0, and the
    matching zero-padded w2 rows contribute nothing, so the math is unchanged.
    """
    (w1, b1), (w2, b2), (w3, b3) = params
    h1 = w1.shape[1]
    pad = hidden_pad - h1
    if pad > 0:
        w1 = jnp.pad(w1, ((0, 0), (0, pad)))
        b1 = jnp.pad(b1, ((0, 0), (0, pad)))
        w2 = jnp.pad(w2, ((0, pad), (0, 0)))
    cast_w = lambda w: w.astype(jnp.bfloat16)
    cast_b = lambda b: b.astype(jnp.float32)
    return ((cast_w(w1), cast_b(b1)),
            (cast_w(w2), cast_b(b2)),
            (cast_w(w3), cast_b(b3)))


def vanilla_generator_forward(z, prepared_params, image_dimensions, *,
                              tm=1024, out_dtype=jnp.bfloat16):
    """Runs the batch-tiled fused Pallas kernel, then reshapes to NCHW.

    Output dtype is bf16 by default (halves HBM writeback of the mem-bound kernel);
    pass out_dtype=jnp.float32 to upcast OUTSIDE the kernel if the caller needs f32.
    """
    (w1, b1), (w2, b2), (w3, b3) = prepared_params
    n, z_dim = z.shape
    out_features = w3.shape[1]

    # Batch tile: multiple of 16 (bf16 sublane packing), capped so the grid has at
    # least 2 steps when N allows it (v7x megacore sharding over both TCs).
    tm = _round_up(max(tm, 16), 16)
    tm_eff = min(tm, max(16, _round_up(_cdiv(n, 2), 16)))
    grid = (_cdiv(n, tm_eff),)                 # partial last block masked by Pallas

    z_p = z.astype(jnp.bfloat16)

    const_spec = lambda shape: pl.BlockSpec(shape, lambda i: (0, 0))  # VMEM-resident

    flat = pl.pallas_call(
        vanilla_generator_kernel,
        out_shape=jax.ShapeDtypeStruct((n, out_features), jnp.bfloat16),
        grid_spec=pltpu.PrefetchScalarGridSpec(
            num_scalar_prefetch=0,
            grid=grid,
            in_specs=[
                pl.BlockSpec((tm_eff, z_dim), lambda i: (i, 0)),      # z tile
                const_spec(w1.shape), const_spec(b1.shape),
                const_spec(w2.shape), const_spec(b2.shape),
                const_spec(w3.shape), const_spec(b3.shape),
            ],
            out_specs=pl.BlockSpec((tm_eff, out_features), lambda i: (i, 0)),
        ),
        compiler_params=pltpu.CompilerParams(
            dimension_semantics=("parallel",),        # v7x: shard batch over 2 TCs
            vmem_limit_bytes=32 * 1024 * 1024,        # explicit, safe on v5e/v6e/v7x
        ),
    )(z_p, w1, b1, w2, b2, w3, b3)

    c, h, w = image_dimensions
    img = flat.reshape(-1, c, h, w)                   # img.view(-1, C, H, W) equivalent
    if out_dtype != jnp.bfloat16:
        img = img.astype(out_dtype)                   # upcast outside the kernel only
    return img


# ------------------------- deterministic parameter init ----------------------
def init_linear(key, in_features, out_features):
    """Mimics nn.Linear default init: U(-1/sqrt(fan_in), 1/sqrt(fan_in)).
    Weight stored as (in, out) == PyTorch W.T; bias as (1, out)."""
    kw, kb = jax.random.split(key)
    bound = 1.0 / math.sqrt(in_features)
    w = jax.random.uniform(kw, (in_features, out_features), jnp.float32,
                           minval=-bound, maxval=bound)
    b = jax.random.uniform(kb, (1, out_features), jnp.float32,
                           minval=-bound, maxval=bound)
    return w, b


def reference_forward(z, params, image_dimensions):
    """Pure-JAX f32 reference matching the PyTorch module (also the recommended
    dispatch target for tiny batches where launch + weight DMA dominate)."""
    (w1, b1), (w2, b2), (w3, b3) = params
    h1 = jnp.maximum(z @ w1 + b1, 0.0)
    h2 = jnp.maximum(h1 @ w2 + b2, 0.0)
    h3 = jnp.tanh(h2 @ w3 + b3)
    c, h, w = image_dimensions
    return h3.reshape(-1, c, h, w)


if __name__ == "__main__":
    # network_structure (small, consistent with the module's forward)
    z_dim = 32
    hidden1, hidden2 = 64, 128
    image_dimensions = (4, 8, 8)                 # (C, H, W)
    out_features = image_dimensions[0] * image_dimensions[1] * image_dimensions[2]

    key = jax.random.PRNGKey(0)
    k_z, k_z2, k1, k2, k3 = jax.random.split(key, 5)

    params = (
        init_linear(k1, z_dim, hidden1),
        init_linear(k2, hidden1, hidden2),
        init_linear(k3, hidden2, out_features),
    )
    prepared = prepare_params(params, hidden_pad=128)

    # --- case 1: tiny batch (N=2), single (partial) grid step ---------------
    batch = 2
    z = jax.random.normal(k_z, (batch, z_dim), jnp.float32)
    img = vanilla_generator_forward(z, prepared, image_dimensions)
    img = jax.block_until_ready(img)

    assert img.shape == (batch,) + image_dimensions, img.shape
    assert img.dtype == jnp.bfloat16, img.dtype
    assert bool(jnp.all(jnp.abs(img.astype(jnp.float32)) <= 1.0))     # tanh bounded

    ref = reference_forward(z, params, image_dimensions)
    err = float(jnp.max(jnp.abs(img.astype(jnp.float32) - ref)))
    assert err <= 2.5e-2, err                                         # bf16 tolerance

    # --- case 2: N=48 -> 2 grid steps (one partial), exercises masking ------
    batch2 = 48
    z2 = jax.random.normal(k_z2, (batch2, z_dim), jnp.float32)
    img2 = jax.block_until_ready(
        vanilla_generator_forward(z2, prepared, image_dimensions))
    assert img2.shape == (batch2,) + image_dimensions, img2.shape
    ref2 = reference_forward(z2, params, image_dimensions)
    err2 = float(jnp.max(jnp.abs(img2.astype(jnp.float32) - ref2)))
    assert err2 <= 2.5e-2, err2

    print("KERNEL_OK")
</pallas_src>

<mosaic_0001>
module attributes {stable_mosaic.version = 11 : i64} {
  func.func @vanilla_generator_kernel(%arg0: i32, %arg1: memref<16x32xbf16, #tpu.memory_space<vmem>>, %arg2: memref<32x128xbf16, #tpu.memory_space<vmem>>, %arg3: memref<1x128xf32, #tpu.memory_space<vmem>>, %arg4: memref<128x128xbf16, #tpu.memory_space<vmem>>, %arg5: memref<1x128xf32, #tpu.memory_space<vmem>>, %arg6: memref<128x256xbf16, #tpu.memory_space<vmem>>, %arg7: memref<1x256xf32, #tpu.memory_space<vmem>>, %arg8: memref<16x256xbf16, #tpu.memory_space<vmem>>) attributes {dimension_semantics = [#tpu.dimension_semantics<parallel>], iteration_bounds = array<i64: 1>, scalar_prefetch = 0 : i64, scratch_operands = 0 : i64, tpu.core_type = #tpu.core_type<tc>, window_params = [{transform_indices = @transform_0, window_bounds = array<i64: 16, 32>}, {pipeline_mode = #tpu.pipeline_mode<synchronous>, transform_indices = @transform_1, window_bounds = array<i64: 32, 128>}, {pipeline_mode = #tpu.pipeline_mode<synchronous>, transform_indices = @transform_2, window_bounds = array<i64: 1, 128>}, {pipeline_mode = #tpu.pipeline_mode<synchronous>, transform_indices = @transform_3, window_bounds = array<i64: 128, 128>}, {pipeline_mode = #tpu.pipeline_mode<synchronous>, transform_indices = @transform_4, window_bounds = array<i64: 1, 128>}, {pipeline_mode = #tpu.pipeline_mode<synchronous>, transform_indices = @transform_5, window_bounds = array<i64: 128, 256>}, {pipeline_mode = #tpu.pipeline_mode<synchronous>, transform_indices = @transform_6, window_bounds = array<i64: 1, 256>}, {transform_indices = @transform_7, window_bounds = array<i64: 16, 256>}]} {
    %c0 = arith.constant 0 : index
    %c0_0 = arith.constant 0 : index
    %0 = vector.load %arg1[%c0, %c0_0] : memref<16x32xbf16, #tpu.memory_space<vmem>>, vector<16x32xbf16>
    %c0_1 = arith.constant 0 : index
    %c0_2 = arith.constant 0 : index
    %1 = vector.load %arg2[%c0_1, %c0_2] : memref<32x128xbf16, #tpu.memory_space<vmem>>, vector<32x128xbf16>
    %cst = arith.constant dense<0.000000e+00> : vector<16x128xf32>
    %2 = tpu.matmul %0, %1, %cst {dimension_numbers = #tpu.dot_dimension_numbers<[1], [0], [0], [1], [0, 0, 1, 1], [], []>} : vector<16x32xbf16>, vector<32x128xbf16>, vector<16x128xf32> -> vector<16x128xf32>
    %c0_3 = arith.constant 0 : index
    %c0_4 = arith.constant 0 : index
    %3 = vector.load %arg3[%c0_3, %c0_4] : memref<1x128xf32, #tpu.memory_space<vmem>>, vector<1x128xf32>
    %4 = vector.broadcast %3 : vector<1x128xf32> to vector<16x128xf32>
    %5 = arith.addf %2, %4 : vector<16x128xf32>
    %cst_5 = arith.constant 0.000000e+00 : f32
    %6 = vector.broadcast %cst_5 : f32 to vector<16x128xf32>
    %7 = arith.maximumf %5, %6 : vector<16x128xf32>
    %8 = arith.truncf %7 : vector<16x128xf32> to vector<16x128xbf16>
    %c0_6 = arith.constant 0 : index
    %c0_7 = arith.constant 0 : index
    %9 = vector.load %arg4[%c0_6, %c0_7] : memref<128x128xbf16, #tpu.memory_space<vmem>>, vector<128x128xbf16>
    %cst_8 = arith.constant dense<0.000000e+00> : vector<16x128xf32>
    %10 = tpu.matmul %8, %9, %cst_8 {dimension_numbers = #tpu.dot_dimension_numbers<[1], [0], [0], [1], [0, 0, 1, 1], [], []>} : vector<16x128xbf16>, vector<128x128xbf16>, vector<16x128xf32> -> vector<16x128xf32>
    %c0_9 = arith.constant 0 : index
    %c0_10 = arith.constant 0 : index
    %11 = vector.load %arg5[%c0_9, %c0_10] : memref<1x128xf32, #tpu.memory_space<vmem>>, vector<1x128xf32>
    %12 = vector.broadcast %11 : vector<1x128xf32> to vector<16x128xf32>
    %13 = arith.addf %10, %12 : vector<16x128xf32>
    %cst_11 = arith.constant 0.000000e+00 : f32
    %14 = vector.broadcast %cst_11 : f32 to vector<16x128xf32>
    %15 = arith.maximumf %13, %14 : vector<16x128xf32>
    %16 = arith.truncf %15 : vector<16x128xf32> to vector<16x128xbf16>
    %c0_12 = arith.constant 0 : index
    %c0_13 = arith.constant 0 : index
    %17 = vector.load %arg6[%c0_12, %c0_13] : memref<128x256xbf16, #tpu.memory_space<vmem>>, vector<128x256xbf16>
    %cst_14 = arith.constant dense<0.000000e+00> : vector<16x256xf32>
    %18 = tpu.matmul %16, %17, %cst_14 {dimension_numbers = #tpu.dot_dimension_numbers<[1], [0], [0], [1], [0, 0, 1, 1], [], []>} : vector<16x128xbf16>, vector<128x256xbf16>, vector<16x256xf32> -> vector<16x256xf32>
    %c0_15 = arith.constant 0 : index
    %c0_16 = arith.constant 0 : index
    %19 = vector.load %arg7[%c0_15, %c0_16] : memref<1x256xf32, #tpu.memory_space<vmem>>, vector<1x256xf32>
    %20 = vector.broadcast %19 : vector<1x256xf32> to vector<16x256xf32>
    %21 = arith.addf %18, %20 : vector<16x256xf32>
    %22 = math.tanh %21 : vector<16x256xf32>
    %23 = arith.truncf %22 : vector<16x256xf32> to vector<16x256xbf16>
    %c0_17 = arith.constant 0 : index
    %c0_18 = arith.constant 0 : index
    %24 = vector.load %arg8[%c0_17, %c0_18] : memref<16x256xbf16, #tpu.memory_space<vmem>>, vector<16x256xbf16>
    tpu.vector_store %arg8[%c0_17, %c0_18], %23 {strides = array<i32>} : memref<16x256xbf16, #tpu.memory_space<vmem>>, vector<16x256xbf16>,
    return
  }
  func.func @transform_0(%arg0: i32) -> (i32, i32) {
    %c0_i32 = arith.constant 0 : i32
    %c0_i32_0 = arith.constant 0 : i32
    return %arg0, %c0_i32 : i32, i32
  }
  func.func @transform_1(%arg0: i32) -> (i32, i32) {
    %c0_i32 = arith.constant 0 : i32
    %c0_i32_0 = arith.constant 0 : i32
    %c0_i32_1 = arith.constant 0 : i32
    return %c0_i32, %c0_i32_0 : i32, i32
  }
  func.func @transform_2(%arg0: i32) -> (i32, i32) {
    %c0_i32 = arith.constant 0 : i32
    %c0_i32_0 = arith.constant 0 : i32
    %c0_i32_1 = arith.constant 0 : i32
    return %c0_i32, %c0_i32_0 : i32, i32
  }
  func.func @transform_3(%arg0: i32) -> (i32, i32) {
    %c0_i32 = arith.constant 0 : i32
    %c0_i32_0 = arith.constant 0 : i32
    %c0_i32_1 = arith.constant 0 : i32
    return %c0_i32, %c0_i32_0 : i32, i32
  }
  func.func @transform_4(%arg0: i32) -> (i32, i32) {
    %c0_i32 = arith.constant 0 : i32
    %c0_i32_0 = arith.constant 0 : i32
    %c0_i32_1 = arith.constant 0 : i32
    return %c0_i32, %c0_i32_0 : i32, i32
  }
  func.func @transform_5(%arg0: i32) -> (i32, i32) {
    %c0_i32 = arith.constant 0 : i32
    %c0_i32_0 = arith.constant 0 : i32
    %c0_i32_1 = arith.constant 0 : i32
    return %c0_i32, %c0_i32_0 : i32, i32
  }
  func.func @transform_6(%arg0: i32) -> (i32, i32) {
    %c0_i32 = arith.constant 0 : i32
    %c0_i32_0 = arith.constant 0 : i32
    %c0_i32_1 = arith.constant 0 : i32
    return %c0_i32, %c0_i32_0 : i32, i32
  }
  func.func @transform_7(%arg0: i32) -> (i32, i32) {
    %c0_i32 = arith.constant 0 : i32
    %c0_i32_0 = arith.constant 0 : i32
    return %arg0, %c0_i32 : i32, i32
  }
}

</mosaic_0001>

<bundles_post_ra>
// kernel: tpu_custom_call.1
= control target key start
LH: loop header
LB: loop body
LE: loop exit
PB: predicated region body
PF: predicated region fallthrough
CT: control target
= control target key end

     0   :  { %12 = vsyncpa [#allocation3], 0  ;;  %s988_s0 = inlined_call_operand.hbm [shape: bf16[2,32], index: 0, kind: input, shape index: {}]   ;;  %s989_s1 = inlined_call_operand.hbm [shape: bf16[32,128], index: 1, kind: input, shape index: {}]   ;;  %s990_s2 = inlined_call_operand.vmem [shape: f32[1,128], index: 2, kind: input, shape index: {}]   ;;  %s991_s3 = inlined_call_operand.hbm [shape: bf16[128,128], index: 3, kind: input, shape index: {}]   ;;  %s992_s4 = inlined_call_operand.vmem [shape: f32[1,128], index: 4, kind: input, shape index: {}]   ;;  %s993_s5 = inlined_call_operand.hbm [shape: bf16[128,256], index: 5, kind: input, shape index: {}]   ;;  %s994_s6 = inlined_call_operand.vmem [shape: f32[1,256], index: 6, kind: input, shape index: {}]   ;;  %s995_s7 = inlined_call_operand.hbm [shape: bf16[2,256], index: 7, kind: output, shape index: {}]  }
   0x1   :  { %13 = vsyncpa [#allocation6], 0 }
   0x2   :  { %14 = vsyncpa [#allocation9], 0 }
   0x3   :  { %15 = vsyncpa [#allocation4], 0 }
   0x4   :  { %20 = vsyncadd [#allocation3], 112  ;;  %s830_s24 = smov [#allocation5]   ;;  %s712_s28 = scalar_lea.hbm %s989_s1, 256 }
   0x5   :  { %s33_s25 = sshll.u32 %s830_s24, 4  ;;  %p713_p0 = scmp.ne.s32.totalorder %s989_s1, %s712_s28  ;;  %s34_s25 = int_to_ptr.vmem [resolvable:$true] %s33_s25 }
   0x6   :  { %p716_p1 = scmp.lt.u32.totalorder %s712_s28, %s989_s1 }
   0x8   :  { %p718_p2 = pnand %p716_p1, %p713_p0 }
   0xa   :  { %721 = shalt.err (!%p718_p2)
}
   0xb   :  { %s722_s10 = scalar_lea.vmem %s34_s25, 256  ;;  %p727_p4 = scmp.lt.s32.totalorder %s34_s25, %s34_s25 }
   0xc   :  { %p723_p3 = scmp.ne.s32.totalorder %s34_s25, %s722_s10  ;;  %p728_p5 = scmp.lt.s32.totalorder %s722_s10, %s722_s10 }
   0xe   :  { %p729_p6 = por %p728_p5, %p727_p4 }
  0x10   :  { %p730_p7 = pnand %p729_p6, %p723_p3 }
  0x12   :  { %733 = shalt.err (!%p730_p7)
}
  0x13   :  { %s831_s11 = smov 64   ;;  %s832_s12 = smov 4  }
  0x14   :  { %39 = dma.hbm_to_vmem [thread:$0]  %s989_s1, 256, %s34_s25, [#allocation6], %s831_s11, %s831_s11, %s832_s12  }
  0x15   :  { %s833_s15 = smov [#allocation2]   ;;  %s734_s19 = scalar_lea.hbm %s988_s0, 16 }
  0x16   :  { %s21_s16 = sshll.u32 %s833_s15, 4  ;;  %p735_p8 = scmp.ne.s32.totalorder %s988_s0, %s734_s19  ;;  %s22_s16 = int_to_ptr.vmem [resolvable:$true] %s21_s16 }
  0x17   :  { %p738_p9 = scmp.lt.u32.totalorder %s734_s19, %s988_s0 }
  0x19   :  { %p740_p10 = pnand %p738_p9, %p735_p8 }
  0x1b   :  { %743 = shalt.err (!%p740_p10)
}
  0x1c   :  { %s744_s24 = scalar_lea.vmem %s22_s16, 16  ;;  %s748_s1 = scalar_lea.vmem %s22_s16, 128 }
  0x1d   :  { %p745_p11 = scmp.ne.s32.totalorder %s22_s16, %s744_s24  ;;  %p749_p12 = scmp.lt.s32.totalorder %s22_s16, %s22_s16 }
  0x1e   :  { %p750_p13 = scmp.lt.s32.totalorder %s748_s1, %s744_s24 }
  0x20   :  { %p751_p0 = por %p750_p13, %p749_p12 }
  0x22   :  { %p752_p1 = pnand %p751_p0, %p745_p11 }
  0x24   :  { %755 = shalt.err (!%p752_p1)
}
  0x25   :  { %s834_s25 = smov 16   ;;  %s835_s26 = smov 1  }
  0x26   :  { %27 = dma.hbm_to_vmem [thread:$0]  %s988_s0, 16, %s22_s16, [#allocation3], %s834_s25, %s834_s25, %s835_s26  }
  0x27   :  { %s836_s29 = smov [#allocation7]   ;;  %s837_s8 = smov [#allocation8]  }
  0x28   :  { %s47_s30 = sshll.u32 %s836_s29, 4  ;;  %s61_s9 = sshll.u32 %s837_s8, 4  ;;  %s48_s30 = int_to_ptr.vmem [resolvable:$true] %s47_s30  ;;  %s914_s9 = int_to_ptr.vmem [resolvable:$true] %s61_s9 }
  0x29   :  { %s756_s14 = scalar_lea.hbm %s991_s3, 1024 }
  0x2a   :  { %p757_p2 = scmp.ne.s32.totalorder %s991_s3, %s756_s14  ;;  %p760_p3 = scmp.lt.u32.totalorder %s756_s14, %s991_s3 }
  0x2c   :  { %p762_p4 = pnand %p760_p3, %p757_p2 }
  0x2e   :  { %765 = shalt.err (!%p762_p4)
}
  0x2f   :  { %s766_s0 = scalar_lea.vmem %s48_s30, 1024  ;;  %p771_p6 = scmp.lt.s32.totalorder %s48_s30, %s48_s30 }
  0x30   :  { %p767_p5 = scmp.ne.s32.totalorder %s48_s30, %s766_s0  ;;  %p772_p7 = scmp.lt.s32.totalorder %s766_s0, %s766_s0 }
  0x32   :  { %p773_p8 = por %p772_p7, %p771_p6 }
  0x34   :  { %p774_p9 = pnand %p773_p8, %p767_p5 }
  0x36   :  { %777 = shalt.err (!%p774_p9)
}
  0x37   :  { %53 = dma.hbm_to_vmem [thread:$0]  %s991_s3, 1024, %s48_s30, [#allocation6], %s831_s11, %s831_s11, %s832_s12  }
  0x38   :  { %s778_s23 = scalar_lea.hbm %s993_s5, 2048 }
  0x39   :  { %p779_p10 = scmp.ne.s32.totalorder %s993_s5, %s778_s23  ;;  %p782_p11 = scmp.lt.u32.totalorder %s778_s23, %s993_s5 }
  0x3b   :  { %p784_p12 = pnand %p782_p11, %p779_p10 }
  0x3d   :  { %787 = shalt.err (!%p784_p12)
}
  0x3e   :  { %s788_s27 = scalar_lea.vmem %s914_s9, 2048  ;;  %p793_p0 = scmp.lt.s32.totalorder %s914_s9, %s914_s9 }
  0x3f   :  { %p789_p13 = scmp.ne.s32.totalorder %s914_s9, %s788_s27  ;;  %p794_p1 = scmp.lt.s32.totalorder %s788_s27, %s788_s27 }
  0x41   :  { %p795_p2 = por %p794_p1, %p793_p0 }
  0x43   :  { %p796_p3 = pnand %p795_p2, %p789_p13 }
  0x45   :  { %799 = shalt.err (!%p796_p3)
}
  0x46   :  { %s838_s3 = smov 128   ;;  %s839_s11 = smov 8  }
  0x47   :  { %67 = dma.hbm_to_vmem [thread:$0]  %s993_s5, 2048, %s914_s9, [#allocation9], %s838_s3, %s838_s3, %s839_s11  }
  0x48   :  { %822 = dma.done.wait [#allocation3], 128  }
  0x49   :  { %823 = vsyncadd [#allocation3], 4294967168 }
  0x4a   :  { %824 = dma.done.wait [#allocation6], 1280  }
  0x4b   :  { %825 = vsyncadd [#allocation6], 4294966016 }
  0x4c   :  { %826 = dma.done.wait [#allocation9], 2048  }
  0x4d   :  { %827 = vsyncadd [#allocation9], 4294965248  ;;  %v117_v0 = vlaneseq  ;;  %v840_v1 = vmov 0.0   ;;  %vm841_vm0 = vmmov 0   ;;  %v842_v2 = vmov 1966171168  }
  0x4e   :  { %625 = vmatprep.subr.bf16.mxu0 %v840_v1  ;;  %629 = vmatprep.mubr.msk.bf16.mxu0 %vm841_vm0, %v840_v1  ;;  %v115_v3 = vunpack.c.l.s4 %v842_v2  ;;  %v670_v6 = vld [vmem:[#allocation5] sm:$0xff]   ;;  %v671_v7 = vld [vmem:[#allocation5 + $0x8] sm:$0xff]   ;;  %v83_v9 = vld [vmem:[#allocation2] sm:$0x1]  ;;  %vm171_vm1 = vcmask 261120  }
  0x4f   :  { %633 = vmatprep.subr.bf16.mxu1 %v840_v1  ;;  %649 = vmatprep.mubr.msk.bf16.mxu1 %vm841_vm0, %v840_v1  ;;  %v948_v5 = vshrl.u32 %v117_v0, 7  ;;  %v84_v10 = vld [vmem:[#allocation2 + $0x1] sm:$0x1]  ;;  %v85_v11 = vld [vmem:[#allocation2 + $0x2] sm:$0x1]  ;;  %v672_v22 = vld [vmem:[#allocation7] sm:$0xff]  }
  0x50   :  { %v116_v4 = vunpack.c.0.s8 %v115_v3  ;;  %626 = vmatpush3.bf16.msra.mxu0 %v670_v6  ;;  %v86_v12 = vld [vmem:[#allocation2 + $0x3] sm:$0x1]  ;;  %v87_v13 = vld [vmem:[#allocation2 + $0x4] sm:$0x1]  ;;  %v88_v14 = vld [vmem:[#allocation2 + $0x5] sm:$0x1]  ;;  %v110_v15 = vcombine.low %v83_v9, %v84_v10  ;;  %634 = vmatpush3.bf16.msra.mxu1 %v672_v22 }
  0x51   :  { %627 = vmatprep.subr.bf16.mxu0 %v840_v1  ;;  %v89_v16 = vld [vmem:[#allocation2 + $0x6] sm:$0x1]  ;;  %v90_v17 = vld [vmem:[#allocation2 + $0x7] sm:$0x1]  ;;  %v111_v18 = vcombine.low %v85_v11, %v86_v12  ;;  %v112_v19 = vcombine.low %v87_v13, %v88_v14  ;;  %635 = vmatprep.subr.bf16.mxu1 %v840_v1  ;;  %v674_v30 = vld [vmem:[#allocation7 + $0x10] sm:$0xff]   ;;  %v843_v0 = vmov 0  }
  0x52   :  { %v951_v8 = vsub.s32 %v116_v4, %v948_v5  ;;  %v113_v20 = vcombine.low %v89_v16, %v90_v17  ;;  %v673_v26 = vld [vmem:[#allocation7 + $0x8] sm:$0xff]   ;;  %v675_v33 = vld [vmem:[#allocation7 + $0x18] sm:$0xff]   ;;  %v676_v34 = vld [vmem:[#allocation7 + $0x20] sm:$0xff]   ;;  %v354_v13 = vsub.s32 0, %v948_v5 }
  0x53   :  { %v677_v35 = vld [vmem:[#allocation7 + $0x28] sm:$0xff]   ;;  %v678_v36 = vld [vmem:[#allocation7 + $0x30] sm:$0xff]   ;;  %v679_v37 = vld [vmem:[#allocation7 + $0x38] sm:$0xff]  }
  0x54   :  { %v120_v21 = vrot.slane %v110_v15, %v951_v8  ;;  %628 = vmatpush3.bf16.msra.mxu0 %v671_v7  ;;  %v127_v23 = vrot.slane %v111_v18, %v951_v8  ;;  %v134_v24 = vrot.slane %v112_v19, %v951_v8  ;;  %v141_v25 = vrot.slane %v113_v20, %v951_v8  ;;  %v680_v38 = vld [vmem:[#allocation8] ss:$8 sps:$4 sm:$0xff]   ;;  %v682_v39 = vld [vmem:[#allocation8 + $0x4] ss:$8 sps:$4 sm:$0xff]   ;;  %v685_v40 = vld [vmem:[#allocation8 + $0x14] ss:$8 sps:$4 sm:$0xff]  }
  0x55   :  { %636 = vmatpush3.bf16.msra.mxu1 %v673_v26  ;;  %442 = vmatprep.subr.bf16.mxu0 %v682_v39  ;;  %v683_v41 = vld [vmem:[#allocation8 + $0x10] ss:$8 sps:$4 sm:$0xff]   ;;  %v688_v42 = vld [vmem:[#allocation8 + $0x24] ss:$8 sps:$4 sm:$0xff]   ;;  %v686_v43 = vld [vmem:[#allocation8 + $0x20] ss:$8 sps:$4 sm:$0xff]  }
  0x56   :  { %v142_v27 = vcombine.low %v120_v21, %v127_v23  ;;  %v143_v28 = vcombine.low %v134_v24, %v141_v25  ;;  %637 = vmatprep.subr.bf16.mxu1 %v840_v1  ;;  %v691_v44 = vld [vmem:[#allocation8 + $0x34] ss:$8 sps:$4 sm:$0xff]   ;;  %v689_v45 = vld [vmem:[#allocation8 + $0x30] ss:$8 sps:$4 sm:$0xff]   ;;  %v694_v46 = vld [vmem:[#allocation8 + $0x44] ss:$8 sps:$4 sm:$0xff]  }
  0x57   :  { %v692_v47 = vld [vmem:[#allocation8 + $0x40] ss:$8 sps:$4 sm:$0xff]   ;;  %v697_v48 = vld [vmem:[#allocation8 + $0x54] ss:$8 sps:$4 sm:$0xff]   ;;  %v695_v49 = vld [vmem:[#allocation8 + $0x50] ss:$8 sps:$4 sm:$0xff]  }
  0x58   :  { %v150_v29 = vrot.slane %v142_v27, %v951_v8  ;;  %v157_v31 = vrot.slane %v143_v28, %v951_v8  ;;  %v578_v50 = vld [vmem:[%s990_s2] ss:$0 sm:$0xff]  ;;  %v700_v60 = vld [vmem:[#allocation8 + $0x64] ss:$8 sps:$4 sm:$0xff]   ;;  %v703_v62 = vld [vmem:[#allocation8 + $0x74] ss:$8 sps:$4 sm:$0xff]  }
  0x59   :  { %638 = vmatpush3.bf16.msra.mxu1 %v674_v30  ;;  %v698_v61 = vld [vmem:[#allocation8 + $0x60] ss:$8 sps:$4 sm:$0xff]   ;;  %v701_v63 = vld [vmem:[#allocation8 + $0x70] ss:$8 sps:$4 sm:$0xff]   ;;  %v358_v15 = vsub.s32 1, %v948_v5 }
  0x5a   :  { %v158_v32 = vcombine.low %v150_v29, %v157_v31  ;;  %639 = vmatprep.subr.bf16.mxu1 %v840_v1  ;;  %v350_v14 = vld [vmem:[%s994_s6] sm:$0x3] }
  0x5b   :  { %v355_v16 = vrot.slane %v350_v14, %v354_v13  ;;  %v359_v17 = vrot.slane %v350_v14, %v358_v15 }
  0x5c   :  { %630 = vmatmul.mubr.msk.bf16.vlgmr.msra.gmra.mrb[0].mxu0 %vm171_vm1, %v158_v32 }
  0x5d   :  { %640 = vmatpush3.bf16.msra.mxu1 %v675_v33  ;;  %443 = vmatpush1.bf16.msra.mxu0 %v680_v38 }
  0x5e   :  { %641 = vmatprep.subr.bf16.mxu1 %v840_v1  ;;  %444 = vmatprep.subr.bf16.mxu0 %v685_v40 }
  0x5f   :  { %474 = vmatprep.mubr.bf16.mxu0 %v843_v0 }
  0x61   :  { %642 = vmatpush3.bf16.msra.mxu1 %v676_v34  ;;  %445 = vmatpush1.bf16.msra.mxu0 %v683_v41 }
  0x62   :  { %643 = vmatprep.subr.bf16.mxu1 %v840_v1  ;;  %446 = vmatprep.subr.bf16.mxu0 %v688_v42 }
  0x65   :  { %644 = vmatpush3.bf16.msra.mxu1 %v677_v35  ;;  %447 = vmatpush1.bf16.msra.mxu0 %v686_v43 }
  0x66   :  { %645 = vmatprep.subr.bf16.mxu1 %v840_v1  ;;  %448 = vmatprep.subr.bf16.mxu0 %v691_v44 }
  0x69   :  { %646 = vmatpush3.bf16.msra.mxu1 %v678_v36  ;;  %449 = vmatpush1.bf16.msra.mxu0 %v689_v45 }
  0x6a   :  { %647 = vmatprep.subr.bf16.mxu1 %v840_v1  ;;  %450 = vmatprep.subr.bf16.mxu0 %v694_v46  ;;  %v582_v1 = vld [vmem:[%s992_s4] ss:$0 sm:$0xff] }
  0x6d   :  { %648 = vmatpush3.bf16.msra.mxu1 %v679_v37  ;;  %451 = vmatpush1.bf16.msra.mxu0 %v692_v47 }
  0x6e   :  { %452 = vmatprep.subr.bf16.mxu0 %v697_v48 }
  0x71   :  { %453 = vmatpush1.bf16.msra.mxu0 %v695_v49 }
  0x72   :  { %454 = vmatprep.subr.bf16.mxu0 %v700_v60 }
  0x75   :  { %455 = vmatpush1.bf16.msra.mxu0 %v698_v61 }
  0x76   :  { %456 = vmatprep.subr.bf16.mxu0 %v703_v62 }
  0x79   :  { %457 = vmatpush1.bf16.msra.mxu0 %v701_v63 }
 0x12f   :  { %v209_v51 = vpop.f32.mrb[0].mxu0 }
 0x130   :  { %v210_v52 = vadd.f32 %v578_v50, %v209_v51  ;;  %v631_v53 = vpop.f32.mrb[1].mxu0 }
 0x131   :  { %v212_v54 = vpop.f32.mrb[2].mxu0 }
 0x132   :  { %v213_v55 = vadd.f32 %v578_v50, %v212_v54  ;;  %v632_v56 = vpop.f32.mrb[3].mxu0  ;;  %v216_v57 = vmax.f32 %v210_v52, 0.0 }
 0x134   :  { %v217_v58 = vmax.f32 %v213_v55, 0.0 }
 0x136   :  { %v218_v59 = vpack.c.bf16 %v217_v58, %v216_v57 }
 0x138   :  { %650 = vmatmul.mubr.bf16.vlgmr.msra.gmra.mrb[0].mxu1 %v218_v59 }
 0x20b   :  { %v324_v2 = vpop.f32.mrb[0].mxu1 }
 0x20c   :  { %v325_v3 = vadd.f32 %v582_v1, %v324_v2  ;;  %v651_v4 = vpop.f32.mrb[1].mxu1 }
 0x20d   :  { %v327_v6 = vpop.f32.mrb[2].mxu1 }
 0x20e   :  { %v328_v7 = vadd.f32 %v582_v1, %v327_v6  ;;  %v652_v9 = vpop.f32.mrb[3].mxu1  ;;  %v331_v10 = vmax.f32 %v325_v3, 0.0 }
 0x210   :  { %v332_v11 = vmax.f32 %v328_v7, 0.0 }
 0x212   :  { %v333_v12 = vpack.c.bf16 %v332_v11, %v331_v10 }
 0x214   :  { %475 = vmatmul.mubr.bf16.vlgmr.msra.gmra.mrb[4].mxu0 %v333_v12 }
 0x2e7   :  { %v476_v18 = vpop.f32.mrb[4].mxu0 }
 0x2e8   :  { %v477_v19 = vadd.f32 %v476_v18, %v355_v16  ;;  %v478_v20 = vpop.f32.mrb[5].mxu0 }
 0x2e9   :  { %v479_v21 = vadd.f32 %v478_v20, %v359_v17  ;;  %v480_v22 = vpop.f32.mrb[6].mxu0 }
 0x2ea   :  { %704 = vtanh.f32 %v477_v19  ;;  %v481_v23 = vadd.f32 %v480_v22, %v355_v16  ;;  %v482_v24 = vpop.f32.mrb[7].mxu0 }
 0x2eb   :  { %706 = vtanh.f32 %v479_v21  ;;  %v483_v25 = vadd.f32 %v482_v24, %v359_v17 }
 0x2ec   :  { %708 = vtanh.f32 %v481_v23 }
 0x2ed   :  { %710 = vtanh.f32 %v483_v25 }
 0x2f4   :  { %v705_v26 = vpop.eup %704 }
 0x2f5   :  { %v707_v27 = vpop.eup %706 }
 0x2f6   :  { %v709_v28 = vpop.eup %708  ;;  %v607_v29 = vpack.c.bf16 %v707_v27, %v705_v26 }
 0x2f7   :  { %v711_v30 = vpop.eup %710 }
 0x2f8   :  { %v501_v5 = vrot.slane %v607_v29, %v951_v8  ;;  %v608_v31 = vpack.c.bf16 %v711_v30, %v709_v28 }
 0x2fa   :  { %v509_v32 = vcombine.high %v501_v5, %v501_v5  ;;  %v517_v33 = vrot.slane %v501_v5, %v951_v8  ;;  %609 = vst.sshfl [vmem:[#allocation10] sm:$0x5 pattern:$0x73625140] %v501_v5  ;;  %v508_v34 = vrot.slane %v608_v31, %v951_v8 }
 0x2fc   :  { %v531_v35 = vrot.slane %v509_v32, %v951_v8  ;;  %v539_v36 = vcombine.high %v517_v33, %v517_v33  ;;  %610 = vst.sshfl [vmem:[#allocation10 + $0x2] sm:$0x5 pattern:$0x73625140] %v509_v32  ;;  %v510_v37 = vcombine.high %v508_v34, %v508_v34  ;;  %v524_v38 = vrot.slane %v508_v34, %v951_v8 }
 0x2fd   :  { %611 = vst.sshfl [vmem:[#allocation10 + $0x8] sm:$0x5 pattern:$0x73625140] %v508_v34 }
 0x2fe   :  { %v541_v39 = vcombine.high %v531_v35, %v531_v35  ;;  %553 = vst [vmem:[#allocation10 + $0x4] sm:$0x3] %v539_v36  ;;  %v538_v40 = vrot.slane %v510_v37, %v951_v8  ;;  %v540_v41 = vcombine.high %v524_v38, %v524_v38  ;;  %612 = vst.sshfl [vmem:[#allocation10 + $0xa] sm:$0x5 pattern:$0x73625140] %v510_v37 }
 0x300   :  { %554 = vst [vmem:[#allocation10 + $0x6] sm:$0x3] %v541_v39  ;;  %v542_v42 = vcombine.high %v538_v40, %v538_v40  ;;  %557 = vst [vmem:[#allocation10 + $0xc] sm:$0x3] %v540_v41 }
 0x302   :  { %558 = vst [vmem:[#allocation10 + $0xe] sm:$0x3] %v542_v42 }
 0x303   :  { %563 = vsyncadd [#allocation4], 224  ;;  %s844_s4 = smov [#allocation10]  }
 0x304   :  { %s564_s6 = sshll.u32 %s844_s4, 4  ;;  %s565_s6 = int_to_ptr.vmem [resolvable:$true] %s564_s6 }
 0x305   :  { %s800_s10 = scalar_lea.vmem %s565_s6, 32  ;;  %s804_s13 = scalar_lea.vmem %s565_s6, 256 }
 0x306   :  { %p801_p4 = scmp.ne.s32.totalorder %s565_s6, %s800_s10  ;;  %p805_p5 = scmp.lt.s32.totalorder %s565_s6, %s565_s6 }
 0x307   :  { %p806_p6 = scmp.lt.s32.totalorder %s804_s13, %s800_s10 }
 0x309   :  { %p807_p7 = por %p806_p6, %p805_p5 }
 0x30b   :  { %p808_p8 = pnand %p807_p7, %p801_p4 }
 0x30d   :  { %811 = shalt.err (!%p808_p8)
}
 0x30e   :  { %s812_s17 = scalar_lea.hbm %s995_s7, 32 }
 0x30f   :  { %p813_p9 = scmp.ne.s32.totalorder %s995_s7, %s812_s17  ;;  %p816_p10 = scmp.lt.u32.totalorder %s812_s17, %s995_s7 }
 0x311   :  { %p818_p11 = pnand %p816_p10, %p813_p9 }
 0x313   :  { %821 = shalt.err (!%p818_p11)
}
 0x314   :  { %s845_s20 = smov 32   ;;  %s846_s21 = smov 2  }
 0x315   :  { %570 = dma.vmem_to_hbm [thread:$0]  %s565_s6, 32, %s995_s7, [#allocation4], %s845_s20, %s845_s20, %s846_s21  }
 0x316   :  { %828 = dma.done.wait [#allocation4], 256  }
 0x317   :  { %829 = vsyncadd [#allocation4], 4294967040 }
 0x318   :  { %574 = vsyncpa [#allocation3], 1 }
 0x319   :  { %575 = vsyncpa [#allocation6], 1 }
 0x31a   :  { %576 = vsyncpa [#allocation9], 1 }
 0x31b   :  { %577 = vsyncpa [#allocation4], 1 }

</bundles_post_ra>
